<compile_context>
chip_gen: v5e
topology: v5e:2x2
jax: 0.10.0
libtpu: 0.0.40
codegen_flags: <defaults>
</compile_context>

<pallas_src>
import math

import jax
import jax.numpy as jnp
from jax import lax
from jax.experimental import pallas as pl
from jax.experimental.pallas import tpu as pltpu


def _round_up(x, m):
    return ((x + m - 1) // m) * m


def _cdiv(a, b):
    return (a + b - 1) // b


def _device_kind():
    try:
        return jax.devices()[0].device_kind.lower()
    except Exception:
        return ""


def _generation_params(kind):
    """Returns (vmem_budget_bytes, vmem_limit_bytes_or_None, max_row_chunks)."""
    if "v7" in kind or "7x" in kind:
        # 64 MiB physical VMEM per TensorCore, 2 cores each hold their own
        # double buffers -> keep the per-core footprint modest.
        return 24 << 20, None, 2
    if "v6" in kind:
        # 128 MiB physical, 32 MiB default scoped limit -> raise explicitly.
        return 48 << 20, 64 << 20, 1
    # v5e (16 MiB default scoped VMEM) / unknown chip: conservative.
    return 12 << 20, None, 1


def _choose_tiles(B, C, itemsize, budget, max_chunks,
                  max_tile_rows=None, max_tile_cols=None):
    """Pick (tile_b, tile_c, num_chunks, row_steps, col_steps)."""
    # Column tile: lane-dense (multiple of 128) when C allows it, else the full
    # row (block dim equal to the array dim is always legal).
    if C % 128 == 0:
        # Cap so that at least ~64 rows fit in the budget.
        cap = max(128, (budget // (64 * (4 * itemsize + 4))) // 128 * 128)
        if max_tile_cols is not None:
            cap = max(128, min(cap, (max_tile_cols // 128) * 128))
        tile_c = min(C, cap)
    else:
        tile_c = C
    lane_c = _round_up(tile_c, 128)

    # Per-row VMEM: x,y double-buffered input blocks + f32 accumulator row.
    per_row = 2 * 2 * lane_c * itemsize + lane_c * 4
    # Fixed: (1, tile_c) f32 weight row (sublane-padded, double-buffered) + slack.
    fixed = 2 * 8 * lane_c * 4 + (64 << 10)
    tile_b_max = max(8, ((max(budget - fixed, 0)) // per_row) // 8 * 8)
    if max_tile_rows is not None:
        tile_b_max = max(8, min(tile_b_max, (max_tile_rows // 8) * 8))

    num_chunks = max_chunks if (max_chunks > 1 and B > 16) else 1
    rows_per_chunk = _cdiv(B, num_chunks)

    if num_chunks == 1 and rows_per_chunk <= tile_b_max:
        # Single block over the full row dim (any size legal when == full dim).
        tile_b = B
        row_steps = 1
    else:
        # Right-size: split rows evenly over the minimum number of steps.
        row_steps = _cdiv(rows_per_chunk, tile_b_max)
        tile_b = min(_round_up(_cdiv(rows_per_chunk, row_steps), 8), tile_b_max)
        row_steps = _cdiv(rows_per_chunk, tile_b)

    col_steps = _cdiv(C, tile_c)
    return tile_b, tile_c, num_chunks, row_steps, col_steps


def _make_kernel(row_steps, tile_b, tile_c, n_rows, n_cols,
                 need_row_mask, need_col_mask):
    def kernel(x_ref, y_ref, w_ref, o_ref, acc_ref):
        ch = pl.program_id(0)   # row-chunk ("parallel" for v7x megacore)
        r = pl.program_id(1)    # row block within chunk
        c = pl.program_id(2)    # column block

        @pl.when((r == 0) & (c == 0))
        def _():
            acc_ref[...] = jnp.zeros_like(acc_ref)

        d = x_ref[...].astype(jnp.float32) - y_ref[...].astype(jnp.float32)
        term = d * d * w_ref[...]                 # (tile_b, tile_c) * (1, tile_c)

        # Tail masking (replaces the old host-side jnp.pad).  Masks are built
        # on thin (tile_b,1)/(1,tile_c) iotas; the select also discards any
        # garbage loaded from partial boundary blocks (incl. the weight row).
        if need_row_mask or need_col_mask:
            valid = None
            if need_row_mask:
                row0 = (ch * row_steps + r) * tile_b
                rid = lax.broadcasted_iota(jnp.int32, (tile_b, 1), 0) + row0
                valid = rid < n_rows
            if need_col_mask:
                cid = lax.broadcasted_iota(jnp.int32, (1, tile_c), 1) + c * tile_c
                cmask = cid < n_cols
                valid = cmask if valid is None else (valid & cmask)
            term = jnp.where(valid, term, 0.0)

        acc_ref[...] += term

        @pl.when((r == pl.num_programs(1) - 1) & (c == pl.num_programs(2) - 1))
        def _():
            o_ref[...] = jnp.sum(acc_ref[...]).reshape(1, 1, 1)

    return kernel


def path_planning_path_point_loss(path_point_token, path_point_token_tgt, *,
                                  min_pallas_elements=1 << 20,
                                  _debug_max_tile_rows=None,
                                  _debug_max_tile_cols=None,
                                  _debug_num_chunks=None):
    """Pallas equivalent of PathPlanningPathPointLoss.forward."""
    x, y = path_point_token, path_point_token_tgt
    assert x.shape == y.shape, "pred/target shapes must match"
    assert x.ndim >= 2, "expects (..., max_num_for_path, token_dim)"

    *lead, n_points, d_tok = x.shape
    n_total = int(math.prod(x.shape))

    # weight_sequence = linspace(1.0, 1.5, max_num_for_path); f32 regardless of
    # cfg.dtype_model_torch (accumulation is f32).
    w_pts = jnp.linspace(1.0, 1.5, n_points, dtype=jnp.float32)

    # Tiny-input fast path: kernel launch + DMA setup dwarfs the work.
    if n_total < min_pallas_elements:
        diff = x.astype(jnp.float32) - y.astype(jnp.float32)
        return jnp.mean(diff * diff * w_pts.reshape(n_points, 1))

    B = int(math.prod(lead)) if lead else 1
    C = n_points * d_tok

    # Free row-major reshapes (no HBM copy); lane-dense whenever N*D % 128 == 0.
    x2 = x.reshape(B, C)
    y2 = y.reshape(B, C)
    # Tiny per-column weight row: w_row[0, p*D + d] = w_pts[p].
    w_row = jnp.repeat(w_pts, d_tok).reshape(1, C)

    kind = _device_kind()
    budget, vmem_limit, max_chunks = _generation_params(kind)
    if _debug_num_chunks is not None:
        max_chunks = _debug_num_chunks

    tile_b, tile_c, num_chunks, row_steps, col_steps = _choose_tiles(
        B, C, x2.dtype.itemsize, budget, max_chunks,
        max_tile_rows=_debug_max_tile_rows, max_tile_cols=_debug_max_tile_cols)

    n_row_blocks = _cdiv(B, tile_b)
    need_row_mask = num_chunks * row_steps * tile_b > B
    need_col_mask = col_steps * tile_c > C
    need_clamp = num_chunks * row_steps > n_row_blocks

    if need_clamp:
        # Blocks past the end of the array are clamped to the last valid block
        # (keeps the DMA in-bounds); their rows are masked to 0 in the kernel.
        def xy_map(ch, r, c):
            return (jnp.minimum(ch * row_steps + r, n_row_blocks - 1), c)
    else:
        def xy_map(ch, r, c):
            return (ch * row_steps + r, c)

    kernel = _make_kernel(row_steps, tile_b, tile_c, B, C,
                          need_row_mask, need_col_mask)

    compiler_kwargs = dict(dimension_semantics=("parallel", "arbitrary", "arbitrary"))
    if vmem_limit is not None:
        compiler_kwargs["vmem_limit_bytes"] = vmem_limit

    partials = pl.pallas_call(
        kernel,
        out_shape=jax.ShapeDtypeStruct((num_chunks, 1, 1), jnp.float32),
        grid=(num_chunks, row_steps, col_steps),
        in_specs=[
            pl.BlockSpec((tile_b, tile_c), xy_map),
            pl.BlockSpec((tile_b, tile_c), xy_map),
            pl.BlockSpec((1, tile_c), lambda ch, r, c: (0, c)),
        ],
        out_specs=pl.BlockSpec((1, 1, 1), lambda ch, r, c: (ch, 0, 0)),
        scratch_shapes=[pltpu.VMEM((tile_b, tile_c), jnp.float32)],
        compiler_params=pltpu.CompilerParams(**compiler_kwargs),
    )(x2, y2, w_row)

    return jnp.sum(partials) * jnp.float32(1.0 / n_total)


if __name__ == "__main__":
    key = jax.random.PRNGKey(0)
    k1, k2, k3, k4 = jax.random.split(key, 4)

    # Test 1: demo shape [batch, max_num_for_path, token_dim]; force the Pallas
    # path (the default would take the tiny-input jnp fast path).
    batch, max_num_for_path, token_dim = 2, 8, 32
    x = jax.random.normal(k1, (batch, max_num_for_path, token_dim), dtype=jnp.float32)
    y = jax.random.normal(k2, (batch, max_num_for_path, token_dim), dtype=jnp.float32)

    loss = path_planning_path_point_loss(x, y, min_pallas_elements=0)
    loss = jax.block_until_ready(loss)

    w = jnp.linspace(1.0, 1.5, max_num_for_path, dtype=jnp.float32)
    ref = jnp.mean(((x - y) ** 2) * w[None, :, None])
    assert jnp.allclose(loss, ref, rtol=1e-4, atol=1e-6), (loss, ref)

    # Test 2: exercise the in-kernel tail masking / clamping / column tiling /
    # multi-chunk paths with small debug tile caps (still a small problem).
    b2, n2, d2 = 50, 12, 32      # B=50, C=384 (multiple of 128)
    x2 = jax.random.normal(k3, (b2, n2, d2), dtype=jnp.float32)
    y2 = jax.random.normal(k4, (b2, n2, d2), dtype=jnp.float32)

    loss2 = path_planning_path_point_loss(
        x2, y2, min_pallas_elements=0,
        _debug_max_tile_rows=8, _debug_max_tile_cols=256, _debug_num_chunks=2)
    loss2 = jax.block_until_ready(loss2)

    w2 = jnp.linspace(1.0, 1.5, n2, dtype=jnp.float32)
    ref2 = jnp.mean(((x2 - y2) ** 2) * w2[None, :, None])
    assert jnp.allclose(loss2, ref2, rtol=1e-4, atol=1e-6), (loss2, ref2)

    print("KERNEL_OK")
</pallas_src>

<mosaic_0001>
module attributes {stable_mosaic.version = 11 : i64} {
  func.func @kernel(%arg0: i32, %arg1: i32, %arg2: i32, %arg3: memref<2x256xf32, #tpu.memory_space<vmem>>, %arg4: memref<2x256xf32, #tpu.memory_space<vmem>>, %arg5: memref<1x256xf32, #tpu.memory_space<vmem>>, %arg6: memref<1x1x1xf32, #tpu.memory_space<vmem>>, %arg7: memref<2x256xf32, #tpu.memory_space<vmem>>) attributes {dimension_semantics = [#tpu.dimension_semantics<parallel>, #tpu.dimension_semantics<arbitrary>, #tpu.dimension_semantics<arbitrary>], iteration_bounds = array<i64: 1, 1, 1>, scalar_prefetch = 0 : i64, scratch_operands = 1 : i64, tpu.core_type = #tpu.core_type<tc>, window_params = [{transform_indices = @transform_0, window_bounds = array<i64: 2, 256>}, {transform_indices = @transform_1, window_bounds = array<i64: 2, 256>}, {transform_indices = @transform_2, window_bounds = array<i64: 1, 256>}, {transform_indices = @transform_3, window_bounds = array<i64: 1, 1, 1>}]} {
    %c0_i32 = arith.constant 0 : i32
    %0 = arith.cmpi eq, %arg1, %c0_i32 : i32
    %c0_i32_0 = arith.constant 0 : i32
    %1 = arith.cmpi eq, %arg2, %c0_i32_0 : i32
    %2 = arith.andi %0, %1 : i1
    %3 = arith.extui %2 : i1 to i32
    %c0_i32_1 = arith.constant 0 : i32
    %4 = arith.cmpi ne, %3, %c0_i32_1 : i32
    scf.if %4 {
      %cst = arith.constant 0.000000e+00 : f32
      %20 = vector.broadcast %cst : f32 to vector<2x256xf32>
      %c0_14 = arith.constant 0 : index
      %c0_15 = arith.constant 0 : index
      %21 = vector.load %arg7[%c0_14, %c0_15] : memref<2x256xf32, #tpu.memory_space<vmem>>, vector<2x256xf32>
      tpu.vector_store %arg7[%c0_14, %c0_15], %20 {strides = array<i32>} : memref<2x256xf32, #tpu.memory_space<vmem>>, vector<2x256xf32>,
    } else {
    }
    %c0 = arith.constant 0 : index
    %c0_2 = arith.constant 0 : index
    %5 = vector.load %arg3[%c0, %c0_2] : memref<2x256xf32, #tpu.memory_space<vmem>>, vector<2x256xf32>
    %c0_3 = arith.constant 0 : index
    %c0_4 = arith.constant 0 : index
    %6 = vector.load %arg4[%c0_3, %c0_4] : memref<2x256xf32, #tpu.memory_space<vmem>>, vector<2x256xf32>
    %7 = arith.subf %5, %6 : vector<2x256xf32>
    %8 = arith.mulf %7, %7 : vector<2x256xf32>
    %c0_5 = arith.constant 0 : index
    %c0_6 = arith.constant 0 : index
    %9 = vector.load %arg5[%c0_5, %c0_6] : memref<1x256xf32, #tpu.memory_space<vmem>>, vector<1x256xf32>
    %10 = vector.broadcast %9 : vector<1x256xf32> to vector<2x256xf32>
    %11 = arith.mulf %8, %10 : vector<2x256xf32>
    %c0_7 = arith.constant 0 : index
    %c0_8 = arith.constant 0 : index
    %12 = vector.load %arg7[%c0_7, %c0_8] : memref<2x256xf32, #tpu.memory_space<vmem>>, vector<2x256xf32>
    %13 = arith.addf %12, %11 : vector<2x256xf32>
    %c0_9 = arith.constant 0 : index
    %c0_10 = arith.constant 0 : index
    %14 = vector.load %arg7[%c0_9, %c0_10] : memref<2x256xf32, #tpu.memory_space<vmem>>, vector<2x256xf32>
    tpu.vector_store %arg7[%c0_9, %c0_10], %13 {strides = array<i32>} : memref<2x256xf32, #tpu.memory_space<vmem>>, vector<2x256xf32>,
    %c0_i32_11 = arith.constant 0 : i32
    %15 = arith.cmpi eq, %arg1, %c0_i32_11 : i32
    %c0_i32_12 = arith.constant 0 : i32
    %16 = arith.cmpi eq, %arg2, %c0_i32_12 : i32
    %17 = arith.andi %15, %16 : i1
    %18 = arith.extui %17 : i1 to i32
    %c0_i32_13 = arith.constant 0 : i32
    %19 = arith.cmpi ne, %18, %c0_i32_13 : i32
    scf.if %19 {
      %c0_14 = arith.constant 0 : index
      %c0_15 = arith.constant 0 : index
      %20 = vector.load %arg7[%c0_14, %c0_15] : memref<2x256xf32, #tpu.memory_space<vmem>>, vector<2x256xf32>
      %21 = vector.shape_cast %20 : vector<2x256xf32> to vector<1x2x256xf32>
      %cst = arith.constant dense<0.000000e+00> : vector<1xf32>
      %22 = vector.multi_reduction <add>, %21, %cst [1, 2] : vector<1x2x256xf32> to vector<1xf32>
      %23 = vector.shape_cast %22 : vector<1xf32> to vector<1x1x1xf32>
      %24 = vector.extract %23[0, 0, 0] : f32 from vector<1x1x1xf32>
      %25 = vector.broadcast %24 : f32 to vector<1x1x1xf32>
      %c0_16 = arith.constant 0 : index
      %c0_17 = arith.constant 0 : index
      %c0_18 = arith.constant 0 : index
      %26 = vector.load %arg6[%c0_16, %c0_17, %c0_18] : memref<1x1x1xf32, #tpu.memory_space<vmem>>, vector<1x1x1xf32>
      tpu.vector_store %arg6[%c0_16, %c0_17, %c0_18], %25 {strides = array<i32>} : memref<1x1x1xf32, #tpu.memory_space<vmem>>, vector<1x1x1xf32>,
    } else {
    }
    return
  }
  func.func @transform_0(%arg0: i32, %arg1: i32, %arg2: i32) -> (i32, i32) {
    %c1_i32 = arith.constant 1 : i32
    %0 = arith.muli %arg0, %c1_i32 : i32
    %1 = arith.addi %0, %arg1 : i32
    %c0_i32 = arith.constant 0 : i32
    return %1, %arg2 : i32, i32
  }
  func.func @transform_1(%arg0: i32, %arg1: i32, %arg2: i32) -> (i32, i32) {
    %c1_i32 = arith.constant 1 : i32
    %0 = arith.muli %arg0, %c1_i32 : i32
    %1 = arith.addi %0, %arg1 : i32
    %c0_i32 = arith.constant 0 : i32
    return %1, %arg2 : i32, i32
  }
  func.func @transform_2(%arg0: i32, %arg1: i32, %arg2: i32) -> (i32, i32) {
    %c0_i32 = arith.constant 0 : i32
    %c0_i32_0 = arith.constant 0 : i32
    return %c0_i32, %arg2 : i32, i32
  }
  func.func @transform_3(%arg0: i32, %arg1: i32, %arg2: i32) -> (i32, i32, i32) {
    %c0_i32 = arith.constant 0 : i32
    %c0_i32_0 = arith.constant 0 : i32
    %c0_i32_1 = arith.constant 0 : i32
    return %arg0, %c0_i32, %c0_i32_0 : i32, i32, i32
  }
}

</mosaic_0001>

<bundles_post_ra>
// kernel: tpu_custom_call.1
= control target key start
LH: loop header
LB: loop body
LE: loop exit
PB: predicated region body
PF: predicated region fallthrough
CT: control target
= control target key end

     0   :  { %8 = vsyncpa [#allocation4], 0  ;;  %s277_s0 = inlined_call_operand.hbm [shape: f32[2,256], index: 0, kind: input, shape index: {}]   ;;  %s278_s1 = inlined_call_operand.hbm [shape: f32[2,256], index: 1, kind: input, shape index: {}]   ;;  %s279_s2 = inlined_call_operand.hbm [shape: f32[1,256], index: 2, kind: input, shape index: {}]   ;;  %s280_s3 = inlined_call_operand.hbm [shape: f32[1,1,1], index: 3, kind: output, shape index: {}]  }
   0x1   :  { %9 = vsyncpa [#allocation7], 0  ;;  %s35_s14 = sshll.u32 %s278_s1, 4  ;;  %s36_s14 = int_to_ptr.hbm [resolvable:$true] %s35_s14 }
   0x2   :  { %10 = vsyncpa [#allocation5], 0  ;;  %s240_s15 = smov [#allocation6]   ;;  %s20_s19 = sshll.u32 %s277_s0, 4  ;;  %s21_s19 = int_to_ptr.hbm [resolvable:$true] %s20_s19 }
   0x3   :  { %s37_s16 = sshll.u32 %s240_s15, 4  ;;  %s241_s20 = smov [#allocation3]   ;;  %s38_s16 = int_to_ptr.vmem [resolvable:$true] %s37_s16 }
   0x4   :  { %40 = dma.hbm_to_vmem [thread:$0]  %s36_s14, 64, %s38_s16, [#allocation7]  }
   0x5   :  { %s22_s21 = sshll.u32 %s241_s20, 4  ;;  %s46_s24 = sshll.u32 %s279_s2, 4  ;;  %s23_s21 = int_to_ptr.vmem [resolvable:$true] %s22_s21  ;;  %s47_s24 = int_to_ptr.hbm [resolvable:$true] %s46_s24 }
   0x6   :  { %25 = dma.hbm_to_vmem [thread:$0]  %s21_s19, 64, %s23_s21, [#allocation4]  }
   0x7   :  { %s242_s1 = smov [#allocation8]  }
   0x8   :  { %s48_s25 = sshll.u32 %s242_s1, 4  ;;  %s49_s25 = int_to_ptr.vmem [resolvable:$true] %s48_s25 }
   0x9   :  { %51 = dma.hbm_to_vmem [thread:$0]  %s47_s24, 32, %s49_s25, [#allocation7]  }
   0xa   :  { %234 = dma.done.wait [#allocation4], 64  }
   0xb   :  { %235 = vsyncadd [#allocation4], 4294967232 }
   0xc   :  { %236 = dma.done.wait [#allocation7], 96  }
   0xd   :  { %237 = vsyncadd [#allocation7], 4294967200  ;;  %v243_v0 = vmov 0.0   ;;  %v73_v1 = vld [vmem:[#allocation3] sm:$0xf]  ;;  %vm82_vm0 = vcmask 1041408  }
   0xe   :  { %72 = vst [vmem:[#allocation2] sm:$0xf] %v243_v0  ;;  %v74_v2 = vld [vmem:[#allocation6] sm:$0xf]  ;;  %v77_v3 = vld [vmem:[#allocation8] sm:$0x3] }
   0xf   :  { %v75_v4 = vsub.f32 %v73_v1, %v74_v2  ;;  %v79_v5 = vperm.slane %v77_v3, 0  ;;  %v80_v6 = vperm.slane %v77_v3, 1  ;;  %s244_s0 = smov [#allocation9]   ;;  %s120_s28 = sshll.u32 %s280_s3, 4  ;;  %vm111_vm1 = vcmask 0   ;;  %s121_s28 = int_to_ptr.hbm [resolvable:$true] %s120_s28 }
  0x10   :  { %s118_s2 = sshll.u32 %s244_s0, 4  ;;  %s119_s2 = int_to_ptr.vmem [resolvable:$true] %s118_s2 }
  0x11   :  { %v76_v7 = vmul.f32 %v75_v4, %v75_v4  ;;  %v81_v8 = vrot.slane %v80_v6, 6 }
  0x13   :  { %v83_v9 = vsel %vm82_vm0, %v79_v5, %v81_v8 }
  0x14   :  { %v85_v11 = vmul.f32 %v83_v9, %v76_v7 }
  0x15   :  { %v86_v10 = vld [vmem:[#allocation2] sm:$0xf] }
  0x16   :  { %v87_v12 = vadd.f32 %v86_v10, %v85_v11 }
  0x18   :  { %88 = vst [vmem:[#allocation2] sm:$0xf] %v87_v12 }
  0x1f   :  { %v91_v13 = vld [vmem:[#allocation2] sm:$0xf] }
  0x20   :  { %93 = vst [vmem:[#allocation1] ss:$4 sm:$0xff] %v91_v13 }
  0x27   :  { %v94_v14 = vld.sshfl [vmem:[#allocation1] sm:$0xff pattern:$0x73625140]  ;;  %v95_v15 = vld.sshfl [vmem:[#allocation1 + $0x8] sm:$0xff pattern:$0x73625140] }
  0x28   :  { %v98_v16 = vsel %vm82_vm0, %v94_v14, 0.0  ;;  %v99_v17 = vsel %vm82_vm0, %v95_v15, 0.0 }
  0x29   :  { %v100_v18 = vadd.f32 %v99_v17, %v98_v16 }
  0x2b   :  { %101 = vadd.xlane.f32.xlu0 %v100_v18 }
  0x9e   :  { %v102_v19 = vpop.xlane.xlu0 %101 }
  0x9f   :  { %v103_v20 = vrot.slane %v102_v19, 4 }
  0xa1   :  { %v104_v21 = vadd.f32 %v103_v20, %v102_v19 }
  0xa3   :  { %v105_v22 = vrot.slane %v104_v21, 2 }
  0xa5   :  { %v106_v23 = vadd.f32 %v105_v22, %v104_v21 }
  0xa7   :  { %v107_v24 = vrot.slane %v106_v23, 1 }
  0xa9   :  { %v108_v25 = vadd.f32 %v107_v24, %v106_v23 }
  0xab   :  { %131 = vpush %v108_v25 }
  0xdc   :  { %s132_s29 = spop %131 }
  0xdd   :  { %v110_v26 = vstv %s132_s29 }
  0xde   :  { %112 = vst.msk [vmem:[#allocation9] sm:$0x1] %vm111_vm1, %v110_v26 }
  0xdf   :  { %123 = dma.vmem_to_hbm [thread:$0]  %s119_s2, 16, %s121_s28, [#allocation5]  }
  0xe0   :  { %238 = dma.done.wait [#allocation5], 16  }
  0xe1   :  { %239 = vsyncadd [#allocation5], 4294967280 }
  0xe2   :  { %128 = vsyncpa [#allocation4], 1 }
  0xe3   :  { %129 = vsyncpa [#allocation7], 1 }
  0xe4   :  { %130 = vsyncpa [#allocation5], 1 }

</bundles_post_ra>
